<compile_context>
chip_gen: v7x
topology: tpu7x:2x2x1
jax: 0.10.0
libtpu: 0.0.40
codegen_flags: <defaults>
</compile_context>

<pallas_src>
import jax
import jax.numpy as jnp
from jax import lax
from jax.experimental import pallas as pl
from jax.experimental.pallas import tpu as pltpu


def _round_up(x, m):
    return (x + m - 1) // m * m


def _cdiv(a, b):
    return (a + b - 1) // b


_VT_CHUNK = 512             # contraction chunk: multiple of 256 -> MXU-aligned on v5e/v6e/v7x
_MXU_MAX_TABLE_ROWS = 2048  # one-hot matmul only beats the DMA gather for small tables
# TODO(synk): lower _MXU_MAX_TABLE_ROWS (~1024) on v5e, whose MXU is ~4.6x slower.


def _vmem_budget_bytes():
    """Per-TensorCore VMEM budget (leave headroom for compiler scratch)."""
    try:
        cap = pltpu.get_tpu_info().vmem_capacity_bytes
    except Exception:
        cap = 64 * 1024 * 1024                       # conservative default (v7x per-core)
    return min(int(cap * 3 // 4), 100 * 1024 * 1024)  # ~48 MiB on v7x, ~96 MiB on v5e/v6e


def _pick_ts(s, b, max_ts):
    """Sequence-tile size: sublane-aligned, and >= 2 grid steps when B == 1 (megacore)."""
    ts = max_ts if s >= max_ts else _round_up(s, 8)
    if b == 1 and s > 8 and _cdiv(s, ts) < 2:
        ts = _round_up((s + 1) // 2, 8)
    return ts


def _mxu_table_geometry(vt):
    """Pad the combined-table row count and pick the contraction chunk."""
    if vt <= _VT_CHUNK:
        vt_pad = _round_up(vt, 256)
        return vt_pad, vt_pad
    vt_pad = _round_up(vt, _VT_CHUNK)
    return vt_pad, _VT_CHUNK


# --------------------------------------------------------------------------- #
# Path 1: MXU one-hot gather (VMEM-resident table, small vocabularies only).
# --------------------------------------------------------------------------- #
def _make_onehot_kernel(ts, d, vt_pad, vt_chunk):
    n_chunks = vt_pad // vt_chunk

    def kernel(ids_ref, table_ref, o_ref):
        # ids_ref:   (1, 1, TS, 1) int32  remapped row ids for this tile
        # table_ref: (VT_pad, D)          [learned; wte] table, VMEM-resident
        # o_ref:     (1, TS, D)
        ids = ids_ref[0, 0]                                          # (TS, 1)
        lane = lax.broadcasted_iota(jnp.int32, (1, vt_chunk), 1)     # 1-D iota, hoisted
        acc = jnp.zeros((ts, d), jnp.float32)
        for c in range(n_chunks):                                    # static, small trip count
            off = c * vt_chunk
            onehot = (ids == (lane + off)).astype(table_ref.dtype)   # (TS, VT_CHUNK)
            acc = acc + jnp.dot(onehot, table_ref[off:off + vt_chunk, :],
                                preferred_element_type=jnp.float32)
        o_ref[0, :, :] = acc.astype(o_ref.dtype)

    return kernel


def _mxu_gather(ids, table, B, S, D, vt_pad, vt_chunk, ts, out_dtype, vmem_limit):
    sg = _cdiv(S, ts)
    s_pad = sg * ts
    if s_pad != S:
        # Pad ids only (-> row 0); padded positions land beyond S and are masked
        # by the output writeback, so there is NO post-kernel output slice.
        ids = jnp.pad(ids, ((0, 0), (0, s_pad - S)))
    ids_r = ids.reshape(B, sg, ts, 1)                  # long axis on sublanes

    if vt_pad != table.shape[0]:
        table = jnp.pad(table, ((0, vt_pad - table.shape[0]), (0, 0)))

    itemsize = jnp.dtype(out_dtype).itemsize
    cost = pl.CostEstimate(
        flops=2 * B * s_pad * vt_pad * D,
        transcendentals=0,
        bytes_accessed=vt_pad * D * itemsize + ids_r.size * 4 + B * S * D * itemsize)

    kernel = _make_onehot_kernel(ts, D, vt_pad, vt_chunk)

    def build(table_spec):
        return pl.pallas_call(
            kernel,
            out_shape=jax.ShapeDtypeStruct((B, S, D), out_dtype),
            grid_spec=pltpu.PrefetchScalarGridSpec(
                num_scalar_prefetch=0,
                grid=(B, sg),
                in_specs=[pl.BlockSpec((1, 1, ts, 1), lambda b, g: (b, g, 0, 0)),
                          table_spec],
                out_specs=pl.BlockSpec((1, ts, D), lambda b, g: (b, g, 0))),
            compiler_params=pltpu.CompilerParams(
                dimension_semantics=("parallel", "parallel"),
                vmem_limit_bytes=vmem_limit),
            cost_estimate=cost)

    try:
        # Constant index map + single buffer: table DMA'd into VMEM once, never
        # re-fetched and never double-buffered.
        spec = pl.BlockSpec((vt_pad, D), lambda b, g: (0, 0),
                            pipeline_mode=pl.Buffered(1))
        return build(spec)(ids_r, table)
    except Exception:
        # TODO(synk): drop this fallback once Buffered(1) single-buffering is
        # guaranteed by the minimum supported JAX version (budget assumes 2x table).
        spec = pl.BlockSpec((vt_pad, D), lambda b, g: (0, 0))
        return build(spec)(ids_r, table)


# --------------------------------------------------------------------------- #
# Path 2 (default for LLM-scale vocabularies): HBM row-gather via manual DMA.
# --------------------------------------------------------------------------- #
def _make_dma_gather_kernel(ts, sg):
    def kernel(ids_smem, table_hbm, o_ref, stage, sem):
        # ids_smem:  (B * Sg * TS,) int32, scalar-prefetched into SMEM
        # table_hbm: (VT, D) combined table, stays in HBM
        # o_ref:     (1, TS, D) VMEM output tile
        # stage:     (TS, D) VMEM staging buffer;  sem: single DMA semaphore
        b = pl.program_id(0)
        g = pl.program_id(1)
        base = (b * sg + g) * ts

        def issue(t, carry):
            row = ids_smem[base + t]
            pltpu.make_async_copy(table_hbm.at[pl.ds(row, 1)],
                                  stage.at[pl.ds(t, 1)], sem).start()
            return carry

        def drain(t, carry):
            # Same-shape descriptor: each wait retires exactly one row-sized copy.
            pltpu.make_async_copy(table_hbm.at[pl.ds(0, 1)],
                                  stage.at[pl.ds(t, 1)], sem).wait()
            return carry

        lax.fori_loop(0, ts, issue, 0)    # TS in-flight row DMAs
        lax.fori_loop(0, ts, drain, 0)
        o_ref[0, :, :] = stage[...].astype(o_ref.dtype)   # one lane-dense store

    return kernel


def _dma_gather(ids, table, B, S, D, out_dtype, vmem_limit):
    ts = _pick_ts(S, B, 128)
    sg = _cdiv(S, ts)
    s_pad = sg * ts
    if s_pad != S:
        ids = jnp.pad(ids, ((0, 0), (0, s_pad - S)))  # pad -> row 0 (valid); masked on writeback
    ids_flat = ids.reshape(-1)                         # 1-D: avoids 2-D SMEM padding blowup

    itemsize = jnp.dtype(out_dtype).itemsize
    cost = pl.CostEstimate(
        flops=0,
        transcendentals=0,
        bytes_accessed=B * s_pad * D * itemsize + ids_flat.size * 4 + B * S * D * itemsize)

    kernel = _make_dma_gather_kernel(ts, sg)

    return pl.pallas_call(
        kernel,
        out_shape=jax.ShapeDtypeStruct((B, S, D), out_dtype),
        grid_spec=pltpu.PrefetchScalarGridSpec(
            num_scalar_prefetch=1,                          # ids -> SMEM
            grid=(B, sg),
            in_specs=[pl.BlockSpec(memory_space=pl.ANY)],   # table stays in HBM
            out_specs=pl.BlockSpec((1, ts, D), lambda b, g, _ids: (b, g, 0)),
            scratch_shapes=[pltpu.VMEM((ts, D), table.dtype),
                            pltpu.SemaphoreType.DMA]),
        compiler_params=pltpu.CompilerParams(
            dimension_semantics=("parallel", "parallel"),
            vmem_limit_bytes=vmem_limit),
        cost_estimate=cost,
    )(ids_flat, table)


# --------------------------------------------------------------------------- #
# Wrapper (forward pass of PreSoftEmbedding).
# --------------------------------------------------------------------------- #
def pre_soft_embedding(tokens, wte_weight, learned_embedding, n_tokens,
                       *, table_dtype=None, force_path=None):
    """Pallas implementation of PreSoftEmbedding.forward.

    table_dtype: optionally cast the combined [learned; wte] table (and output) to
      e.g. bf16 to halve VMEM residency / HBM traffic; defaults to wte's dtype so
      the torch semantics are preserved bit-exactly.
    force_path: None (auto) | "mxu" | "dma".
    """
    B, S = tokens.shape
    V, D = wte_weight.shape
    T, D2 = learned_embedding.shape
    assert T == n_tokens and D2 == D and S >= n_tokens

    out_dtype = wte_weight.dtype if table_dtype is None else jnp.dtype(table_dtype)
    tokens = tokens.astype(jnp.int32)

    # Combined table: rows [0, T) = learned prefix, rows [T, T+V) = vocab.
    VT = T + V
    table = jnp.concatenate([learned_embedding.astype(out_dtype),
                             wte_weight.astype(out_dtype)], axis=0)

    # Remap positions to rows of the combined table (once, in the wrapper).
    pos = jnp.arange(S, dtype=jnp.int32)[None, :]
    ids = jnp.where(pos < T, pos, T + tokens)
    # Clamp: sentinel / out-of-range token ids can never address outside the table
    # (torch nn.Embedding would raise; we clip like jnp.take's default mode).
    ids = jnp.clip(ids, 0, VT - 1)

    vmem_limit = _vmem_budget_bytes()
    itemsize = jnp.dtype(out_dtype).itemsize

    # Path selection: MXU one-hot gather only when the combined table is small and
    # table + double-buffered out tile + chunked intermediates fit the VMEM budget;
    # otherwise use the DMA row gather (no O(V) extra FLOPs per token).
    vt_pad, vt_chunk = _mxu_table_geometry(VT)
    ts_mxu = _pick_ts(S, B, 256)
    mxu_vmem = (2 * vt_pad * D * itemsize              # table (2x: may be double-buffered)
                + 2 * ts_mxu * D * itemsize            # double-buffered output tile
                + ts_mxu * vt_chunk * (4 + itemsize)   # compare + one-hot intermediates
                + ts_mxu * D * 4)                      # f32 accumulator
    use_mxu = vt_pad <= _MXU_MAX_TABLE_ROWS and mxu_vmem <= vmem_limit - (4 << 20)
    if force_path == "mxu":
        use_mxu = True
    elif force_path == "dma":
        use_mxu = False

    if use_mxu:
        return _mxu_gather(ids, table, B, S, D, vt_pad, vt_chunk, ts_mxu,
                           out_dtype, vmem_limit)
    return _dma_gather(ids, table, B, S, D, out_dtype, vmem_limit)


def reference(tokens, wte_weight, learned_embedding, n_tokens):
    B = tokens.shape[0]
    input_emb = jnp.take(wte_weight, tokens[:, n_tokens:], axis=0)       # [B, S-T, D]
    learned = jnp.broadcast_to(learned_embedding[None],
                               (B,) + learned_embedding.shape)           # [B, T, D]
    return jnp.concatenate([learned, input_emb], axis=1)


if __name__ == "__main__":
    key = jax.random.PRNGKey(0)
    k_wte, k_tok = jax.random.split(key)

    V, D = 32, 128          # small vocab, hidden = 128 (lane-aligned)
    B, S = 2, 12            # batch = 2, seq = 12
    n_tokens = 4            # soft-prompt length (module default is 10; small here)

    wte_weight = jax.random.normal(k_wte, (V, D), dtype=jnp.float32)
    # initialize_from_vocab=True -> learned_embedding = wte.weight[:n_tokens]
    learned_embedding = wte_weight[:n_tokens]
    tokens = jax.random.randint(k_tok, (B, S), 0, V, dtype=jnp.int32)

    ref = reference(tokens, wte_weight, learned_embedding, n_tokens)

    # Auto path (tiny combined table -> VMEM-resident MXU one-hot gather).
    out = jax.block_until_ready(
        pre_soft_embedding(tokens, wte_weight, learned_embedding, n_tokens))
    assert out.shape == (B, S, D)
    assert jnp.allclose(out, ref), "MXU one-hot path mismatch vs reference"

    # Forced HBM row-gather path (the default path for LLM-scale vocabularies).
    out_dma = jax.block_until_ready(
        pre_soft_embedding(tokens, wte_weight, learned_embedding, n_tokens,
                           force_path="dma"))
    assert out_dma.shape == (B, S, D)
    assert jnp.allclose(out_dma, ref), "DMA row-gather path mismatch vs reference"

    print("KERNEL_OK")
</pallas_src>

<mosaic_0001>
module attributes {stable_mosaic.version = 11 : i64} {
  func.func @kernel(%arg0: i32, %arg1: i32, %arg2: memref<1x1x16x1xi32, #tpu.memory_space<vmem>>, %arg3: memref<256x128xf32, #tpu.memory_space<vmem>>, %arg4: memref<1x16x128xf32, #tpu.memory_space<vmem>>) attributes {dimension_semantics = [#tpu.dimension_semantics<parallel>, #tpu.dimension_semantics<parallel>], iteration_bounds = array<i64: 2, 1>, scalar_prefetch = 0 : i64, scratch_operands = 0 : i64, tpu.core_type = #tpu.core_type<tc>, window_params = [{transform_indices = @transform_0, window_bounds = array<i64: 1, 1, 16, 1>}, {pipeline_mode = #tpu.pipeline_mode<synchronous>, transform_indices = @transform_1, window_bounds = array<i64: 256, 128>}, {transform_indices = @transform_2, window_bounds = array<i64: 1, 16, 128>}]} {
    %c0 = arith.constant 0 : index
    %c0_0 = arith.constant 0 : index
    %c0_1 = arith.constant 0 : index
    %c0_2 = arith.constant 0 : index
    %0 = vector.load %arg2[%c0, %c0_0, %c0_1, %c0_2] : memref<1x1x16x1xi32, #tpu.memory_space<vmem>>, vector<1x1x16x1xi32>
    %1 = vector.shape_cast %0 : vector<1x1x16x1xi32> to vector<16x1xi32>
    %2 = tpu.iota {dimensions = array<i32: 1>} : vector<1x256xi32>
    %cst = arith.constant 0.000000e+00 : f32
    %3 = vector.broadcast %cst : f32 to vector<16x128xf32>
    %c0_i32 = arith.constant 0 : i32
    %4 = vector.broadcast %c0_i32 : i32 to vector<1x256xi32>
    %5 = arith.addi %2, %4 : vector<1x256xi32>
    %6 = vector.broadcast %1 : vector<16x1xi32> to vector<16x256xi32>
    %7 = vector.broadcast %5 : vector<1x256xi32> to vector<16x256xi32>
    %8 = arith.cmpi eq, %6, %7 : vector<16x256xi32>
    %9 = arith.extui %8 : vector<16x256xi1> to vector<16x256xi32>
    %10 = arith.sitofp %9 : vector<16x256xi32> to vector<16x256xf32>
    %c0_3 = arith.constant 0 : index
    %c0_4 = arith.constant 0 : index
    %11 = vector.load %arg3[%c0_3, %c0_4] : memref<256x128xf32, #tpu.memory_space<vmem>>, vector<256x128xf32>
    %cst_5 = arith.constant dense<0.000000e+00> : vector<16x128xf32>
    %12 = tpu.matmul %10, %11, %cst_5 {dimension_numbers = #tpu.dot_dimension_numbers<[1], [0], [0], [1], [0, 0, 1, 1], [], []>} : vector<16x256xf32>, vector<256x128xf32>, vector<16x128xf32> -> vector<16x128xf32>
    %13 = arith.addf %3, %12 : vector<16x128xf32>
    %c0_6 = arith.constant 0 : index
    %c0_7 = arith.constant 0 : index
    %c0_8 = arith.constant 0 : index
    %14 = vector.load %arg4[%c0_6, %c0_7, %c0_8] : memref<1x16x128xf32, #tpu.memory_space<vmem>>, vector<1x16x128xf32>
    %15 = vector.shape_cast %14 : vector<1x16x128xf32> to vector<16x128xf32>
    %16 = vector.shape_cast %13 : vector<16x128xf32> to vector<1x16x128xf32>
    tpu.vector_store %arg4[%c0_6, %c0_7, %c0_8], %16 {strides = array<i32>} : memref<1x16x128xf32, #tpu.memory_space<vmem>>, vector<1x16x128xf32>,
    return
  }
  func.func @transform_0(%arg0: i32, %arg1: i32) -> (i32, i32, i32, i32) {
    %c0_i32 = arith.constant 0 : i32
    %c0_i32_0 = arith.constant 0 : i32
    %c0_i32_1 = arith.constant 0 : i32
    return %arg0, %arg1, %c0_i32, %c0_i32_0 : i32, i32, i32, i32
  }
  func.func @transform_1(%arg0: i32, %arg1: i32) -> (i32, i32) {
    %c0_i32 = arith.constant 0 : i32
    %c0_i32_0 = arith.constant 0 : i32
    %c0_i32_1 = arith.constant 0 : i32
    return %c0_i32, %c0_i32_0 : i32, i32
  }
  func.func @transform_2(%arg0: i32, %arg1: i32) -> (i32, i32, i32) {
    %c0_i32 = arith.constant 0 : i32
    %c0_i32_0 = arith.constant 0 : i32
    return %arg0, %arg1, %c0_i32 : i32, i32, i32
  }
}

module attributes {stable_mosaic.version = 11 : i64} {
  func.func @kernel(%arg0: i32, %arg1: i32, %arg2: memref<1x1x16x1xi32, #tpu.memory_space<vmem>>, %arg3: memref<256x128xf32, #tpu.memory_space<vmem>>, %arg4: memref<1x16x128xf32, #tpu.memory_space<vmem>>) attributes {dimension_semantics = [#tpu.dimension_semantics<parallel>, #tpu.dimension_semantics<parallel>], iteration_bounds = array<i64: 2, 1>, scalar_prefetch = 0 : i64, scratch_operands = 0 : i64, tpu.core_type = #tpu.core_type<tc>, window_params = [{transform_indices = @transform_0, window_bounds = array<i64: 1, 1, 16, 1>}, {pipeline_mode = #tpu.pipeline_mode<synchronous>, transform_indices = @transform_1, window_bounds = array<i64: 256, 128>}, {transform_indices = @transform_2, window_bounds = array<i64: 1, 16, 128>}]} {
    %c0 = arith.constant 0 : index
    %c0_0 = arith.constant 0 : index
    %c0_1 = arith.constant 0 : index
    %c0_2 = arith.constant 0 : index
    %0 = vector.load %arg2[%c0, %c0_0, %c0_1, %c0_2] : memref<1x1x16x1xi32, #tpu.memory_space<vmem>>, vector<1x1x16x1xi32>
    %1 = vector.shape_cast %0 : vector<1x1x16x1xi32> to vector<16x1xi32>
    %2 = tpu.iota {dimensions = array<i32: 1>} : vector<1x256xi32>
    %cst = arith.constant 0.000000e+00 : f32
    %3 = vector.broadcast %cst : f32 to vector<16x128xf32>
    %c0_i32 = arith.constant 0 : i32
    %4 = vector.broadcast %c0_i32 : i32 to vector<1x256xi32>
    %5 = arith.addi %2, %4 : vector<1x256xi32>
    %6 = vector.broadcast %1 : vector<16x1xi32> to vector<16x256xi32>
    %7 = vector.broadcast %5 : vector<1x256xi32> to vector<16x256xi32>
    %8 = arith.cmpi eq, %6, %7 : vector<16x256xi32>
    %9 = arith.extui %8 : vector<16x256xi1> to vector<16x256xi32>
    %10 = arith.sitofp %9 : vector<16x256xi32> to vector<16x256xf32>
    %c0_3 = arith.constant 0 : index
    %c0_4 = arith.constant 0 : index
    %11 = vector.load %arg3[%c0_3, %c0_4] : memref<256x128xf32, #tpu.memory_space<vmem>>, vector<256x128xf32>
    %cst_5 = arith.constant dense<0.000000e+00> : vector<16x128xf32>
    %12 = tpu.matmul %10, %11, %cst_5 {dimension_numbers = #tpu.dot_dimension_numbers<[1], [0], [0], [1], [0, 0, 1, 1], [], []>} : vector<16x256xf32>, vector<256x128xf32>, vector<16x128xf32> -> vector<16x128xf32>
    %13 = arith.addf %3, %12 : vector<16x128xf32>
    %c0_6 = arith.constant 0 : index
    %c0_7 = arith.constant 0 : index
    %c0_8 = arith.constant 0 : index
    %14 = vector.load %arg4[%c0_6, %c0_7, %c0_8] : memref<1x16x128xf32, #tpu.memory_space<vmem>>, vector<1x16x128xf32>
    %15 = vector.shape_cast %14 : vector<1x16x128xf32> to vector<16x128xf32>
    %16 = vector.shape_cast %13 : vector<16x128xf32> to vector<1x16x128xf32>
    tpu.vector_store %arg4[%c0_6, %c0_7, %c0_8], %16 {strides = array<i32>} : memref<1x16x128xf32, #tpu.memory_space<vmem>>, vector<1x16x128xf32>,
    return
  }
  func.func @transform_0(%arg0: i32, %arg1: i32) -> (i32, i32, i32, i32) {
    %c0_i32 = arith.constant 0 : i32
    %c0_i32_0 = arith.constant 0 : i32
    %c0_i32_1 = arith.constant 0 : i32
    return %arg0, %arg1, %c0_i32, %c0_i32_0 : i32, i32, i32, i32
  }
  func.func @transform_1(%arg0: i32, %arg1: i32) -> (i32, i32) {
    %c0_i32 = arith.constant 0 : i32
    %c0_i32_0 = arith.constant 0 : i32
    %c0_i32_1 = arith.constant 0 : i32
    return %c0_i32, %c0_i32_0 : i32, i32
  }
  func.func @transform_2(%arg0: i32, %arg1: i32) -> (i32, i32, i32) {
    %c0_i32 = arith.constant 0 : i32
    %c0_i32_0 = arith.constant 0 : i32
    return %arg0, %arg1, %c0_i32 : i32, i32, i32
  }
}

</mosaic_0001>

<bundles_post_ra>
// kernel: tpu_custom_call.1
= control target key start
LH: loop header
LB: loop body
LE: loop exit
PB: predicated region body
PF: predicated region fallthrough
CT: control target
= control target key end

     0   :  { %7 = vsyncpa [#allocation3], 0  ;;  %s655_s9 = smov 0   ;;  %s657_s10 = smov 0   ;;  %s738_s0 = inlined_call_operand.vmem [shape: s32[2,1,16,1], index: 0, kind: input, shape index: {}]   ;;  %s739_s1 = inlined_call_operand.hbm [shape: f32[256,128], index: 1, kind: input, shape index: {}]   ;;  %s740_s2 = inlined_call_operand.vmem [shape: f32[2,12,128], index: 2, kind: output, shape index: {}]  }
   0x1   :  { %s659_s11 = smov 0  }
   0x2 LB: > { %s430_s12 = sadd.s32 4294967295, %s633_s11   ;;  %s25_s13 = sadd.s32 1, %s629_s10  ;;  %s633_s11 = sphi %s659_s11, %s13_s11   ;;  %s629_s10 = sphi %s657_s10, %s750_s10   ;;  %s625_s9 = sphi %s655_s9, %s749_s9  }
   0x3   : > { %p27_p0 = scmp.ge.s32.totalorder %s25_s13, 2  ;;  %p432_p1 = scmp.ge.s32.totalorder %s633_s11, 1 }
   0x4   : > { %p107_p2 = scmp.lt.s32.totalorder %s633_s11, 3  ;;  %p680_p4 = scmp.eq.s32.totalorder %s430_s12, 0 }
   0x5   : > { %s752_s13 = smov (%p27_p0, %s25_s13), 0  ;;  %s635_s16 = smov [#allocation2]  }
   0x6   : > { %p676_p3 = pnand %p432_p1, %p107_p2  ;;  %s119_s17 = sshll.u32 %s635_s16, 4  ;;  %s120_s17 = int_to_ptr.vmem [resolvable:$true] %s119_s17 }
   0x7   : > { %s745_s15 = scalar_select %p680_p4, 1, 0 }
   0x8   : > { %s744_s14 = scalar_select %p676_p3, 1, 0 }
   0x9   : > { %p543_p5 = pneg %p676_p3  ;;  %s579_s21 = scalar_lea.hbm %s739_s1, 4096 }
   0xa   : > { %p580_p7 = scmp.ne.s32.totalorder %s739_s1, %s579_s21  ;;  %p586_p11 = scmp.lt.u32.totalorder %s579_s21, %s739_s1 }
   0xb   : > { %p688_p6 = pnand %p680_p4, %p543_p5 }
   0xd   : > { %p581_p8 = pneg %p688_p6 }
   0xf   : > { %p582_p9 = pnand %p581_p8, %p580_p7 }
  0x11   : > { %p583_p10 = pneg %p582_p9 }
  0x13   : > { %p588_p12 = pnand %p586_p11, %p583_p10 }
  0x15   : > { %591 = shalt.err (!%p588_p12)
}
  0x16   : > { %s592_s26 = scalar_lea.vmem %s120_s17, 4096  ;;  %p600_p2 = scmp.lt.s32.totalorder %s120_s17, %s120_s17 }
  0x17   : > { %p593_p13 = scmp.ne.s32.totalorder %s120_s17, %s592_s26  ;;  %p601_p5 = scmp.lt.s32.totalorder %s592_s26, %s592_s26 }
  0x19   : > { %p595_p0 = pnand %p593_p13, %p581_p8  ;;  %p602_p4 = por %p601_p5, %p600_p2 }
  0x1b   : > { %p596_p1 = pneg %p595_p0 }
  0x1d   : > { %p603_p3 = pnand %p602_p4, %p596_p1 }
  0x1f   : > { %606 = shalt.err (!%p603_p3)
}
  0x20   : > { %s636_s27 = smov 128   ;;  %s637_s28 = smov 8  }
  0x21   : > { %546 = dma.hbm_to_vmem [thread:$0]  (!%p688_p6), %s739_s1, 4096, %s120_s17, [#allocation3], %s636_s27, %s636_s27, %s637_s28  }
  0x22   : > { %p747_p7 = scmp.ne.s32.totalorder %s744_s14, 0 }
  0x23   : > { %p748_p9 = scmp.ne.s32.totalorder (!%p747_p7), %s745_s15, 0 }
  0x24   : > { %147 = sbr.rel (%p747_p7) target bundleno = 400 (0x190), region = 28 }
  0x2b   : > { %620 = dma.done.wait (%p748_p9), [#allocation3], 4096  }
  0x2c   : > { %622 = vsyncadd (%p748_p9), [#allocation3], 4294963200  ;;  %p177_p3 = scmp.lt.s32.totalorder %s625_s9, 1  ;;  %v638_v0 = vmov 0   ;;  %v235_v3 = vld [vmem:[#allocation2 + $0x80] sm:$0xff]  ;;  %v236_v4 = vld [vmem:[#allocation2 + $0x88] sm:$0xff]  ;;  %v198_v51 = vlaneseq }
  0x2d   : > { %578 = vset.pattern.permute.xlu0 %v638_v0  ;;  %v219_v5 = vld [vmem:[#allocation2] sm:$0xff]  ;;  %v220_v6 = vld [vmem:[#allocation2 + $0x8] sm:$0xff]  ;;  %v491_v7 = vpack.c.bf16 %v236_v4, %v235_v3  ;;  %v237_v9 = vld [vmem:[#allocation2 + $0x90] sm:$0xff]  ;;  %v639_v55 = vmov 1.0  }
  0x2e   : > { %s754_s9 = smov (!%p177_p3, %s625_s9), 1  ;;  %v493_v8 = vpack.c.bf16 %v220_v6, %v219_v5  ;;  %v238_v10 = vld [vmem:[#allocation2 + $0x98] sm:$0xff]  ;;  %v221_v11 = vld [vmem:[#allocation2 + $0x10] sm:$0xff]  ;;  %v239_v14 = vld [vmem:[#allocation2 + $0xa0] sm:$0xff]  ;;  %v199_v52 = vand.u32 127, %v198_v51 }
  0x2f   : > { %s451_s3 = sshll.u32 %s754_s9, 4  ;;  %v495_v12 = vpack.c.bf16 %v238_v10, %v237_v9  ;;  %v222_v13 = vld [vmem:[#allocation2 + $0x18] sm:$0xff]  ;;  %v240_v15 = vld [vmem:[#allocation2 + $0xa8] sm:$0xff]  ;;  %492 = vmatprep.subr.bf16.mxu0 %v491_v7  ;;  %523 = vmatprep.subr.bf16.mxu1 %v491_v7  ;;  %v223_v18 = vld [vmem:[#allocation2 + $0x20] sm:$0xff] }
  0x30   : > { %s185_s6 = scalar_lea.vmem %s738_s0, %s451_s3  ;;  %494 = vmatpush3.bf16.msra.mxu0 %v493_v8  ;;  %v497_v16 = vpack.c.bf16 %v222_v13, %v221_v11  ;;  %531 = vmatpush3.bf16.msra.mxu1 %v493_v8  ;;  %v499_v17 = vpack.c.bf16 %v240_v15, %v239_v14  ;;  %v224_v19 = vld [vmem:[#allocation2 + $0x28] sm:$0xff]  ;;  %v241_v20 = vld [vmem:[#allocation2 + $0xb0] sm:$0xff]  ;;  %v242_v21 = vld [vmem:[#allocation2 + $0xb8] sm:$0xff]  ;;  %v200_v53 = vadd.s32 128, %v199_v52  ;;  %s194_s12 = scalar_lea.vmem %s740_s2, %s451_s3 }
  0x31   : > { %v196_v1 = vld [vmem:[%s185_s6] sm:$0xff]  ;;  %v197_v2 = vld [vmem:[%s185_s6 + $0x8] sm:$0xff]  ;;  %496 = vmatprep.subr.bf16.mxu0 %v495_v12  ;;  %524 = vmatprep.subr.bf16.mxu1 %v495_v12  ;;  %v501_v22 = vpack.c.bf16 %v224_v19, %v223_v18  ;;  %v503_v23 = vpack.c.bf16 %v242_v21, %v241_v20  ;;  %v225_v24 = vld [vmem:[#allocation2 + $0x30] sm:$0xff] }
  0x32   : > { %202 = vperm.xlu0 %578, %v196_v1   ;;  %v226_v25 = vld [vmem:[#allocation2 + $0x38] sm:$0xff]  ;;  %v243_v26 = vld [vmem:[#allocation2 + $0xc0] sm:$0xff]  ;;  %v244_v27 = vld [vmem:[#allocation2 + $0xc8] sm:$0xff] }
  0x33   : > { %v505_v28 = vpack.c.bf16 %v226_v25, %v225_v24  ;;  %v507_v29 = vpack.c.bf16 %v244_v27, %v243_v26  ;;  %v227_v30 = vld [vmem:[#allocation2 + $0x40] sm:$0xff]  ;;  %v228_v31 = vld [vmem:[#allocation2 + $0x48] sm:$0xff]  ;;  %v245_v32 = vld [vmem:[#allocation2 + $0xd0] sm:$0xff] }
  0x34   : > { %498 = vmatpush3.bf16.msra.mxu0 %v497_v16  ;;  %532 = vmatpush3.bf16.msra.mxu1 %v497_v16  ;;  %v246_v33 = vld [vmem:[#allocation2 + $0xd8] sm:$0xff]  ;;  %v509_v34 = vpack.c.bf16 %v228_v31, %v227_v30  ;;  %v229_v36 = vld [vmem:[#allocation2 + $0x50] sm:$0xff]  ;;  %v247_v38 = vld [vmem:[#allocation2 + $0xe0] sm:$0xff] }
  0x35   : > { %500 = vmatprep.subr.bf16.mxu0 %v499_v17  ;;  %525 = vmatprep.subr.bf16.mxu1 %v499_v17  ;;  %v511_v35 = vpack.c.bf16 %v246_v33, %v245_v32  ;;  %v230_v37 = vld [vmem:[#allocation2 + $0x58] sm:$0xff]  ;;  %v248_v39 = vld [vmem:[#allocation2 + $0xe8] sm:$0xff]  ;;  %v231_v42 = vld [vmem:[#allocation2 + $0x60] sm:$0xff] }
  0x36   : > { %205 = vperm.xlu0 %578, %v197_v2   ;;  %v513_v40 = vpack.c.bf16 %v230_v37, %v229_v36  ;;  %v515_v41 = vpack.c.bf16 %v248_v39, %v247_v38  ;;  %v232_v43 = vld [vmem:[#allocation2 + $0x68] sm:$0xff]  ;;  %v249_v44 = vld [vmem:[#allocation2 + $0xf0] sm:$0xff]  ;;  %v250_v45 = vld [vmem:[#allocation2 + $0xf8] sm:$0xff] }
  0x37   : > { %v517_v46 = vpack.c.bf16 %v232_v43, %v231_v42  ;;  %v519_v47 = vpack.c.bf16 %v250_v45, %v249_v44  ;;  %v233_v48 = vld [vmem:[#allocation2 + $0x70] sm:$0xff]  ;;  %v234_v49 = vld [vmem:[#allocation2 + $0x78] sm:$0xff] }
  0x38   : > { %502 = vmatpush3.bf16.msra.mxu0 %v501_v22  ;;  %533 = vmatpush3.bf16.msra.mxu1 %v501_v22  ;;  %v521_v50 = vpack.c.bf16 %v234_v49, %v233_v48 }
  0x39   : > { %504 = vmatprep.subr.bf16.mxu0 %v503_v23  ;;  %526 = vmatprep.subr.bf16.mxu1 %v503_v23 }
  0x3c   : > { %506 = vmatpush3.bf16.msra.mxu0 %v505_v28  ;;  %534 = vmatpush3.bf16.msra.mxu1 %v505_v28 }
  0x3d   : > { %508 = vmatprep.subr.bf16.mxu0 %v507_v29  ;;  %527 = vmatprep.subr.bf16.mxu1 %v507_v29 }
  0x40   : > { %510 = vmatpush3.bf16.msra.mxu0 %v509_v34  ;;  %535 = vmatpush3.bf16.msra.mxu1 %v509_v34 }
  0x41   : > { %512 = vmatprep.subr.bf16.mxu0 %v511_v35  ;;  %528 = vmatprep.subr.bf16.mxu1 %v511_v35 }
  0x44   : > { %514 = vmatpush3.bf16.msra.mxu0 %v513_v40  ;;  %536 = vmatpush3.bf16.msra.mxu1 %v513_v40 }
  0x45   : > { %516 = vmatprep.subr.bf16.mxu0 %v515_v41  ;;  %529 = vmatprep.subr.bf16.mxu1 %v515_v41 }
  0x48   : > { %518 = vmatpush3.bf16.msra.mxu0 %v517_v46  ;;  %537 = vmatpush3.bf16.msra.mxu1 %v517_v46 }
  0x49   : > { %520 = vmatprep.subr.bf16.mxu0 %v519_v47  ;;  %530 = vmatprep.subr.bf16.mxu1 %v519_v47 }
  0x4c   : > { %522 = vmatpush3.bf16.msra.mxu0 %v521_v50  ;;  %538 = vmatpush3.bf16.msra.mxu1 %v521_v50 }
  0xb1   : > { %v203_v54 = vpop.permute.xlu0 %202 }
  0xb2   : > { %vm207_vm0 = vcmp.eq.s32.totalorder %v203_v54, %v199_v52  ;;  %vm208_vm1 = vcmp.eq.s32.totalorder %v203_v54, %v200_v53 }
  0xb3   : > { %445 = vmatprep.mubr.msk.f32.mxu0 %vm208_vm1, %v639_v55 }
  0xb4   : > { %446 = vmatmul.mubr.msk.f32.vlgmr.msra.gmra.mrb[0].mxu0 %vm207_vm0, %v639_v55 }
  0xb5   : > { %v206_v56 = vpop.permute.xlu0 %205 }
  0xb6   : > { %vm209_vm2 = vcmp.eq.s32.totalorder %v206_v56, %v199_v52  ;;  %vm210_vm3 = vcmp.eq.s32.totalorder %v206_v56, %v200_v53 }
  0xb7   : > { %447 = vmatprep.mubr.msk.f32.mxu1 %vm210_vm3, %v639_v55 }
  0xb8   : > { %448 = vmatmul.mubr.msk.f32.vlgmr.msra.gmra.mrb[0].mxu1 %vm209_vm2, %v639_v55 }
 0x187   : > { %v485_v57 = vpop.f32.mrb[0].mxu0 }
 0x188   : > { %v486_v58 = vpop.f32.mrb[1].mxu0 }
 0x189   : > { %v487_v59 = vadd.f32 %v486_v58, %v485_v57 }
 0x18b   : > { %326 = vst [vmem:[%s194_s12] sm:$0xff] %v487_v59  ;;  %v488_v60 = vpop.f32.mrb[0].mxu1 }
 0x18c   : > { %v489_v61 = vpop.f32.mrb[1].mxu1 }
 0x18d   : > { %v490_v62 = vadd.f32 %v489_v61, %v488_v60 }
 0x18f   : > { %327 = vst [vmem:[%s194_s12 + $0x8] sm:$0xff] %v490_v62 }
 0x190 PF: > { %s13_s11 = sadd.s32 1, %s633_s11   ;;  %s749_s9 = smov %s629_s10 }
 0x191   : > { %p10_p4 = scmp.ge.s32.totalorder %s13_s11, 4   ;;  %s750_s10 = smov %s752_s13 }
 0x193   :  { %12 = sbr.rel (!%p10_p4) target bundleno = 2 (0x2), region = 63 }
 0x19a   :  { %358 = vsyncpa [#allocation3], 1 }
 0x19b   :  { %360 = vsyncpa [#allocation3 + $0x1], 1 }

// kernel: tpu_custom_call.1
= control target key start
LH: loop header
LB: loop body
LE: loop exit
PB: predicated region body
PF: predicated region fallthrough
CT: control target
= control target key end

     0   :  { %7 = vsyncpa [#allocation3], 0  ;;  %s655_s9 = smov 0   ;;  %s657_s10 = smov 0   ;;  %s738_s0 = inlined_call_operand.vmem [shape: s32[2,1,16,1], index: 0, kind: input, shape index: {}]   ;;  %s739_s1 = inlined_call_operand.hbm [shape: f32[256,128], index: 1, kind: input, shape index: {}]   ;;  %s740_s2 = inlined_call_operand.vmem [shape: f32[2,12,128], index: 2, kind: output, shape index: {}]  }
   0x1   :  { %s659_s11 = smov 0  }
   0x2 LB: > { %s430_s12 = sadd.s32 4294967295, %s633_s11   ;;  %s25_s13 = sadd.s32 1, %s629_s10  ;;  %s633_s11 = sphi %s659_s11, %s13_s11   ;;  %s629_s10 = sphi %s657_s10, %s750_s10   ;;  %s625_s9 = sphi %s655_s9, %s749_s9  }
   0x3   : > { %p27_p0 = scmp.ge.s32.totalorder %s25_s13, 2  ;;  %p432_p1 = scmp.ge.s32.totalorder %s633_s11, 1 }
   0x4   : > { %p107_p2 = scmp.lt.s32.totalorder %s633_s11, 3  ;;  %p680_p4 = scmp.eq.s32.totalorder %s430_s12, 0 }
   0x5   : > { %s752_s13 = smov (%p27_p0, %s25_s13), 0  ;;  %s635_s16 = smov [#allocation2]  }
   0x6   : > { %p676_p3 = pnand %p432_p1, %p107_p2  ;;  %s119_s17 = sshll.u32 %s635_s16, 4  ;;  %s120_s17 = int_to_ptr.vmem [resolvable:$true] %s119_s17 }
   0x7   : > { %s745_s15 = scalar_select %p680_p4, 1, 0 }
   0x8   : > { %s744_s14 = scalar_select %p676_p3, 1, 0 }
   0x9   : > { %p543_p5 = pneg %p676_p3  ;;  %s579_s21 = scalar_lea.hbm %s739_s1, 4096 }
   0xa   : > { %p580_p7 = scmp.ne.s32.totalorder %s739_s1, %s579_s21  ;;  %p586_p11 = scmp.lt.u32.totalorder %s579_s21, %s739_s1 }
   0xb   : > { %p688_p6 = pnand %p680_p4, %p543_p5 }
   0xd   : > { %p581_p8 = pneg %p688_p6 }
   0xf   : > { %p582_p9 = pnand %p581_p8, %p580_p7 }
  0x11   : > { %p583_p10 = pneg %p582_p9 }
  0x13   : > { %p588_p12 = pnand %p586_p11, %p583_p10 }
  0x15   : > { %591 = shalt.err (!%p588_p12)
}
  0x16   : > { %s592_s26 = scalar_lea.vmem %s120_s17, 4096  ;;  %p600_p2 = scmp.lt.s32.totalorder %s120_s17, %s120_s17 }
  0x17   : > { %p593_p13 = scmp.ne.s32.totalorder %s120_s17, %s592_s26  ;;  %p601_p5 = scmp.lt.s32.totalorder %s592_s26, %s592_s26 }
  0x19   : > { %p595_p0 = pnand %p593_p13, %p581_p8  ;;  %p602_p4 = por %p601_p5, %p600_p2 }
  0x1b   : > { %p596_p1 = pneg %p595_p0 }
  0x1d   : > { %p603_p3 = pnand %p602_p4, %p596_p1 }
  0x1f   : > { %606 = shalt.err (!%p603_p3)
}
  0x20   : > { %s636_s27 = smov 128   ;;  %s637_s28 = smov 8  }
  0x21   : > { %546 = dma.hbm_to_vmem [thread:$0]  (!%p688_p6), %s739_s1, 4096, %s120_s17, [#allocation3], %s636_s27, %s636_s27, %s637_s28  }
  0x22   : > { %p747_p7 = scmp.ne.s32.totalorder %s744_s14, 0 }
  0x23   : > { %p748_p9 = scmp.ne.s32.totalorder (!%p747_p7), %s745_s15, 0 }
  0x24   : > { %147 = sbr.rel (%p747_p7) target bundleno = 400 (0x190), region = 28 }
  0x2b   : > { %620 = dma.done.wait (%p748_p9), [#allocation3], 4096  }
  0x2c   : > { %622 = vsyncadd (%p748_p9), [#allocation3], 4294963200  ;;  %p177_p3 = scmp.lt.s32.totalorder %s625_s9, 1  ;;  %v638_v0 = vmov 0   ;;  %v235_v3 = vld [vmem:[#allocation2 + $0x80] sm:$0xff]  ;;  %v236_v4 = vld [vmem:[#allocation2 + $0x88] sm:$0xff]  ;;  %v198_v51 = vlaneseq }
  0x2d   : > { %578 = vset.pattern.permute.xlu0 %v638_v0  ;;  %v219_v5 = vld [vmem:[#allocation2] sm:$0xff]  ;;  %v220_v6 = vld [vmem:[#allocation2 + $0x8] sm:$0xff]  ;;  %v491_v7 = vpack.c.bf16 %v236_v4, %v235_v3  ;;  %v237_v9 = vld [vmem:[#allocation2 + $0x90] sm:$0xff]  ;;  %v639_v55 = vmov 1.0  }
  0x2e   : > { %s754_s9 = smov (!%p177_p3, %s625_s9), 1  ;;  %v493_v8 = vpack.c.bf16 %v220_v6, %v219_v5  ;;  %v238_v10 = vld [vmem:[#allocation2 + $0x98] sm:$0xff]  ;;  %v221_v11 = vld [vmem:[#allocation2 + $0x10] sm:$0xff]  ;;  %v239_v14 = vld [vmem:[#allocation2 + $0xa0] sm:$0xff]  ;;  %v199_v52 = vand.u32 127, %v198_v51 }
  0x2f   : > { %s451_s3 = sshll.u32 %s754_s9, 4  ;;  %v495_v12 = vpack.c.bf16 %v238_v10, %v237_v9  ;;  %v222_v13 = vld [vmem:[#allocation2 + $0x18] sm:$0xff]  ;;  %v240_v15 = vld [vmem:[#allocation2 + $0xa8] sm:$0xff]  ;;  %492 = vmatprep.subr.bf16.mxu0 %v491_v7  ;;  %523 = vmatprep.subr.bf16.mxu1 %v491_v7  ;;  %v223_v18 = vld [vmem:[#allocation2 + $0x20] sm:$0xff] }
  0x30   : > { %s185_s6 = scalar_lea.vmem %s738_s0, %s451_s3  ;;  %494 = vmatpush3.bf16.msra.mxu0 %v493_v8  ;;  %v497_v16 = vpack.c.bf16 %v222_v13, %v221_v11  ;;  %531 = vmatpush3.bf16.msra.mxu1 %v493_v8  ;;  %v499_v17 = vpack.c.bf16 %v240_v15, %v239_v14  ;;  %v224_v19 = vld [vmem:[#allocation2 + $0x28] sm:$0xff]  ;;  %v241_v20 = vld [vmem:[#allocation2 + $0xb0] sm:$0xff]  ;;  %v242_v21 = vld [vmem:[#allocation2 + $0xb8] sm:$0xff]  ;;  %v200_v53 = vadd.s32 128, %v199_v52  ;;  %s194_s12 = scalar_lea.vmem %s740_s2, %s451_s3 }
  0x31   : > { %v196_v1 = vld [vmem:[%s185_s6] sm:$0xff]  ;;  %v197_v2 = vld [vmem:[%s185_s6 + $0x8] sm:$0xff]  ;;  %496 = vmatprep.subr.bf16.mxu0 %v495_v12  ;;  %524 = vmatprep.subr.bf16.mxu1 %v495_v12  ;;  %v501_v22 = vpack.c.bf16 %v224_v19, %v223_v18  ;;  %v503_v23 = vpack.c.bf16 %v242_v21, %v241_v20  ;;  %v225_v24 = vld [vmem:[#allocation2 + $0x30] sm:$0xff] }
  0x32   : > { %202 = vperm.xlu0 %578, %v196_v1   ;;  %v226_v25 = vld [vmem:[#allocation2 + $0x38] sm:$0xff]  ;;  %v243_v26 = vld [vmem:[#allocation2 + $0xc0] sm:$0xff]  ;;  %v244_v27 = vld [vmem:[#allocation2 + $0xc8] sm:$0xff] }
  0x33   : > { %v505_v28 = vpack.c.bf16 %v226_v25, %v225_v24  ;;  %v507_v29 = vpack.c.bf16 %v244_v27, %v243_v26  ;;  %v227_v30 = vld [vmem:[#allocation2 + $0x40] sm:$0xff]  ;;  %v228_v31 = vld [vmem:[#allocation2 + $0x48] sm:$0xff]  ;;  %v245_v32 = vld [vmem:[#allocation2 + $0xd0] sm:$0xff] }
  0x34   : > { %498 = vmatpush3.bf16.msra.mxu0 %v497_v16  ;;  %532 = vmatpush3.bf16.msra.mxu1 %v497_v16  ;;  %v246_v33 = vld [vmem:[#allocation2 + $0xd8] sm:$0xff]  ;;  %v509_v34 = vpack.c.bf16 %v228_v31, %v227_v30  ;;  %v229_v36 = vld [vmem:[#allocation2 + $0x50] sm:$0xff]  ;;  %v247_v38 = vld [vmem:[#allocation2 + $0xe0] sm:$0xff] }
  0x35   : > { %500 = vmatprep.subr.bf16.mxu0 %v499_v17  ;;  %525 = vmatprep.subr.bf16.mxu1 %v499_v17  ;;  %v511_v35 = vpack.c.bf16 %v246_v33, %v245_v32  ;;  %v230_v37 = vld [vmem:[#allocation2 + $0x58] sm:$0xff]  ;;  %v248_v39 = vld [vmem:[#allocation2 + $0xe8] sm:$0xff]  ;;  %v231_v42 = vld [vmem:[#allocation2 + $0x60] sm:$0xff] }
  0x36   : > { %205 = vperm.xlu0 %578, %v197_v2   ;;  %v513_v40 = vpack.c.bf16 %v230_v37, %v229_v36  ;;  %v515_v41 = vpack.c.bf16 %v248_v39, %v247_v38  ;;  %v232_v43 = vld [vmem:[#allocation2 + $0x68] sm:$0xff]  ;;  %v249_v44 = vld [vmem:[#allocation2 + $0xf0] sm:$0xff]  ;;  %v250_v45 = vld [vmem:[#allocation2 + $0xf8] sm:$0xff] }
  0x37   : > { %v517_v46 = vpack.c.bf16 %v232_v43, %v231_v42  ;;  %v519_v47 = vpack.c.bf16 %v250_v45, %v249_v44  ;;  %v233_v48 = vld [vmem:[#allocation2 + $0x70] sm:$0xff]  ;;  %v234_v49 = vld [vmem:[#allocation2 + $0x78] sm:$0xff] }
  0x38   : > { %502 = vmatpush3.bf16.msra.mxu0 %v501_v22  ;;  %533 = vmatpush3.bf16.msra.mxu1 %v501_v22  ;;  %v521_v50 = vpack.c.bf16 %v234_v49, %v233_v48 }
  0x39   : > { %504 = vmatprep.subr.bf16.mxu0 %v503_v23  ;;  %526 = vmatprep.subr.bf16.mxu1 %v503_v23 }
  0x3c   : > { %506 = vmatpush3.bf16.msra.mxu0 %v505_v28  ;;  %534 = vmatpush3.bf16.msra.mxu1 %v505_v28 }
  0x3d   : > { %508 = vmatprep.subr.bf16.mxu0 %v507_v29  ;;  %527 = vmatprep.subr.bf16.mxu1 %v507_v29 }
  0x40   : > { %510 = vmatpush3.bf16.msra.mxu0 %v509_v34  ;;  %535 = vmatpush3.bf16.msra.mxu1 %v509_v34 }
  0x41   : > { %512 = vmatprep.subr.bf16.mxu0 %v511_v35  ;;  %528 = vmatprep.subr.bf16.mxu1 %v511_v35 }
  0x44   : > { %514 = vmatpush3.bf16.msra.mxu0 %v513_v40  ;;  %536 = vmatpush3.bf16.msra.mxu1 %v513_v40 }
  0x45   : > { %516 = vmatprep.subr.bf16.mxu0 %v515_v41  ;;  %529 = vmatprep.subr.bf16.mxu1 %v515_v41 }
  0x48   : > { %518 = vmatpush3.bf16.msra.mxu0 %v517_v46  ;;  %537 = vmatpush3.bf16.msra.mxu1 %v517_v46 }
  0x49   : > { %520 = vmatprep.subr.bf16.mxu0 %v519_v47  ;;  %530 = vmatprep.subr.bf16.mxu1 %v519_v47 }
  0x4c   : > { %522 = vmatpush3.bf16.msra.mxu0 %v521_v50  ;;  %538 = vmatpush3.bf16.msra.mxu1 %v521_v50 }
  0xb1   : > { %v203_v54 = vpop.permute.xlu0 %202 }
  0xb2   : > { %vm207_vm0 = vcmp.eq.s32.totalorder %v203_v54, %v199_v52  ;;  %vm208_vm1 = vcmp.eq.s32.totalorder %v203_v54, %v200_v53 }
  0xb3   : > { %445 = vmatprep.mubr.msk.f32.mxu0 %vm208_vm1, %v639_v55 }
  0xb4   : > { %446 = vmatmul.mubr.msk.f32.vlgmr.msra.gmra.mrb[0].mxu0 %vm207_vm0, %v639_v55 }
  0xb5   : > { %v206_v56 = vpop.permute.xlu0 %205 }
  0xb6   : > { %vm209_vm2 = vcmp.eq.s32.totalorder %v206_v56, %v199_v52  ;;  %vm210_vm3 = vcmp.eq.s32.totalorder %v206_v56, %v200_v53 }
  0xb7   : > { %447 = vmatprep.mubr.msk.f32.mxu1 %vm210_vm3, %v639_v55 }
  0xb8   : > { %448 = vmatmul.mubr.msk.f32.vlgmr.msra.gmra.mrb[0].mxu1 %vm209_vm2, %v639_v55 }
 0x187   : > { %v485_v57 = vpop.f32.mrb[0].mxu0 }
 0x188   : > { %v486_v58 = vpop.f32.mrb[1].mxu0 }
 0x189   : > { %v487_v59 = vadd.f32 %v486_v58, %v485_v57 }
 0x18b   : > { %326 = vst [vmem:[%s194_s12] sm:$0xff] %v487_v59  ;;  %v488_v60 = vpop.f32.mrb[0].mxu1 }
 0x18c   : > { %v489_v61 = vpop.f32.mrb[1].mxu1 }
 0x18d   : > { %v490_v62 = vadd.f32 %v489_v61, %v488_v60 }
 0x18f   : > { %327 = vst [vmem:[%s194_s12 + $0x8] sm:$0xff] %v490_v62 }
 0x190 PF: > { %s13_s11 = sadd.s32 1, %s633_s11   ;;  %s749_s9 = smov %s629_s10 }
 0x191   : > { %p10_p4 = scmp.ge.s32.totalorder %s13_s11, 4   ;;  %s750_s10 = smov %s752_s13 }
 0x193   :  { %12 = sbr.rel (!%p10_p4) target bundleno = 2 (0x2), region = 63 }
 0x19a   :  { %358 = vsyncpa [#allocation3], 1 }
 0x19b   :  { %360 = vsyncpa [#allocation3 + $0x1], 1 }

</bundles_post_ra>
